<compile_context>
chip_gen: v6e
topology: v6e:2x2x1
jax: 0.10.0
libtpu: 0.0.40
codegen_flags: <defaults>
</compile_context>

<pallas_src>
import functools

import jax
import jax.numpy as jnp
from jax.experimental import pallas as pl
from jax.experimental.pallas import tpu as pltpu

NEG_SLOPE = 0.01  # PyTorch nn.LeakyReLU default
PAD = 128         # lane width; all feature dims (<= 5*n_params) padded to this
N_ENC = 5
N_DEC = 5
N_LAYERS = N_ENC + N_DEC


def _round_up(x: int, m: int) -> int:
    return (x + m - 1) // m * m


def _leaky_relu(v):
    # slope < 1  =>  leaky_relu(v) == max(v, slope*v); mul+max is cheaper than cmp+select
    return jnp.maximum(v, NEG_SLOPE * v)


# --------------------------------------------------------------------------------------
# Kernel: full MLP for one (TB, 128) batch tile. Weight/bias slabs are VMEM-resident.
# --------------------------------------------------------------------------------------
def autoencoder_kernel(w_ref, b_ref, x_ref, out_ref):
    h = x_ref[...]                                    # (TB, 128) f32
    for l in range(N_LAYERS):                         # static unroll, 10 matmuls
        h = jnp.dot(h, w_ref[l], preferred_element_type=jnp.float32)
        if l < N_ENC:
            h = h + b_ref[l]                          # (1,128) broadcast bias
        if l != N_ENC - 1:                            # last encoder Linear: no activation
            h = _leaky_relu(h)
    out_ref[...] = h.astype(out_ref.dtype)            # one lane-dense (TB,128) store


# --------------------------------------------------------------------------------------
# Model definition / parameter handling
# --------------------------------------------------------------------------------------
def layer_dims(n_params: int):
    d0 = n_params
    d1 = int(n_params * 2.5)
    d2 = max(2, int(n_params * 3.0))
    d3 = max(2, int(n_params * 3.5))
    d4 = max(2, int(n_params * 4.0))
    d5 = max(2, int(n_params * 5.0))
    enc = [(d0, d1), (d1, d2), (d2, d3), (d3, d4), (d4, d5)]
    # NOTE: mirrors the PyTorch code exactly — decoder output dims use int(...) without
    # max(2,...); for very small n_params that is a latent shape mismatch in the original
    # module as well (harmless at n_params=8).
    dec = [(d5, int(n_params * 4.0)),
           (max(2, int(n_params * 4.0)), int(n_params * 3.5)),
           (max(2, int(n_params * 3.5)), int(n_params * 3.0)),
           (max(2, int(n_params * 3.0)), int(n_params * 2.5)),
           (int(n_params * 2.5), n_params)]
    return enc, dec


def init_params(key, n_params: int):
    """PyTorch-Linear-style U(-1/sqrt(fan_in), 1/sqrt(fan_in)); weights in (out, in) layout."""
    enc, dec = layer_dims(n_params)
    enc_w, enc_b, dec_w = [], [], []
    for (fin, fout) in enc:
        key, kw, kb = jax.random.split(key, 3)
        bound = 1.0 / (fin ** 0.5)
        enc_w.append(jax.random.uniform(kw, (fout, fin), jnp.float32, -bound, bound))
        enc_b.append(jax.random.uniform(kb, (fout,), jnp.float32, -bound, bound))
    for (fin, fout) in dec:
        key, kw = jax.random.split(key)
        bound = 1.0 / (fin ** 0.5)
        dec_w.append(jax.random.uniform(kw, (fout, fin), jnp.float32, -bound, bound))
    return enc_w, enc_b, dec_w


def pack_params(enc_w, enc_b, dec_w):
    """One-time layout prep (NOT per forward call): transpose each weight to (in, out),
    zero-pad to (PAD, PAD), stack into a single weight slab + a single bias slab."""
    w_slab = jnp.zeros((N_LAYERS, PAD, PAD), jnp.float32)
    b_slab = jnp.zeros((N_ENC, 1, PAD), jnp.float32)
    for l, w in enumerate(list(enc_w) + list(dec_w)):
        wt = jnp.transpose(w)                                   # (in, out)
        w_slab = w_slab.at[l, :wt.shape[0], :wt.shape[1]].set(wt)
    for l, b in enumerate(enc_b):
        b_slab = b_slab.at[l, 0, :b.shape[0]].set(b)
    return w_slab, b_slab


# --------------------------------------------------------------------------------------
# Forward wrapper (jitted: pad + pallas_call + slice dispatch as one program)
# --------------------------------------------------------------------------------------
@functools.partial(jax.jit, static_argnames=("max_tile",))
def autoencoder_forward(x, w_slab, b_slab, *, max_tile: int = 256):
    batch, n_params = x.shape

    batch_pad = _round_up(max(batch, 8), 8)       # f32 sublane multiple
    tb = min(max_tile, batch_pad)                 # batch tile rows per grid step
    batch_pad = _round_up(batch_pad, tb)
    grid = (batch_pad // tb,)

    # Zero-pad activations into a lane-dense (batch_pad, 128) slab.
    xp = jnp.zeros((batch_pad, PAD), jnp.float32).at[:batch, :n_params].set(x)

    out = pl.pallas_call(
        autoencoder_kernel,
        out_shape=jax.ShapeDtypeStruct((batch_pad, PAD), jnp.float32),
        grid_spec=pltpu.PrefetchScalarGridSpec(
            num_scalar_prefetch=0,
            grid=grid,
            in_specs=[
                # weight/bias slabs: same block for every grid step -> VMEM-resident
                pl.BlockSpec((N_LAYERS, PAD, PAD), lambda i: (0, 0, 0)),
                pl.BlockSpec((N_ENC, 1, PAD), lambda i: (0, 0, 0)),
                # activations: tiled over batch
                pl.BlockSpec((tb, PAD), lambda i: (i, 0)),
            ],
            out_specs=pl.BlockSpec((tb, PAD), lambda i: (i, 0)),
        ),
        compiler_params=pltpu.CompilerParams(
            dimension_semantics=("parallel",),     # batch tiles independent (v7x 2-TC shard)
        ),
    )(w_slab, b_slab, xp)

    return out[:batch, :n_params]


# --------------------------------------------------------------------------------------
# Pure-JAX reference (mirrors the PyTorch forward)
# --------------------------------------------------------------------------------------
def autoencoder_ref(x, enc_w, enc_b, dec_w):
    h = x
    for i, (w, b) in enumerate(zip(enc_w, enc_b)):
        h = h @ w.T + b
        if i < len(enc_w) - 1:
            h = jnp.where(h > 0, h, NEG_SLOPE * h)
    for w in dec_w:
        h = h @ w.T
        h = jnp.where(h > 0, h, NEG_SLOPE * h)
    return h


if __name__ == "__main__":
    n_params = 8

    key = jax.random.PRNGKey(0)
    key, kx, kx2 = jax.random.split(key, 3)
    enc_w, enc_b, dec_w = init_params(key, n_params)
    w_slab, b_slab = pack_params(enc_w, enc_b, dec_w)   # one-time layout prep

    # Small-shape check (batch=2, single tile)
    x = jax.random.normal(kx, (2, n_params), jnp.float32)
    out = jax.block_until_ready(autoencoder_forward(x, w_slab, b_slab))
    ref = autoencoder_ref(x, enc_w, enc_b, dec_w)
    assert out.shape == (2, n_params), out.shape
    assert jnp.allclose(out, ref, atol=1e-5, rtol=1e-5)

    # Multi-tile grid check (batch=520 -> padded to 768 rows, 3 grid steps of 256)
    x2 = jax.random.normal(kx2, (520, n_params), jnp.float32)
    out2 = jax.block_until_ready(autoencoder_forward(x2, w_slab, b_slab))
    ref2 = autoencoder_ref(x2, enc_w, enc_b, dec_w)
    assert out2.shape == (520, n_params), out2.shape
    assert jnp.allclose(out2, ref2, atol=1e-5, rtol=1e-5)

    print("KERNEL_OK")
</pallas_src>

<mosaic_0001>
module attributes {stable_mosaic.version = 11 : i64} {
  func.func @autoencoder_kernel(%arg0: i32, %arg1: memref<10x128x128xf32, #tpu.memory_space<vmem>>, %arg2: memref<5x1x128xf32, #tpu.memory_space<vmem>>, %arg3: memref<8x128xf32, #tpu.memory_space<vmem>>, %arg4: memref<8x128xf32, #tpu.memory_space<vmem>>) attributes {dimension_semantics = [#tpu.dimension_semantics<parallel>], iteration_bounds = array<i64: 1>, scalar_prefetch = 0 : i64, scratch_operands = 0 : i64, tpu.core_type = #tpu.core_type<tc>, window_params = [{pipeline_mode = #tpu.pipeline_mode<synchronous>, transform_indices = @transform_0, window_bounds = array<i64: 10, 128, 128>}, {pipeline_mode = #tpu.pipeline_mode<synchronous>, transform_indices = @transform_1, window_bounds = array<i64: 5, 1, 128>}, {transform_indices = @transform_2, window_bounds = array<i64: 8, 128>}, {transform_indices = @transform_3, window_bounds = array<i64: 8, 128>}]} {
    %c0 = arith.constant 0 : index
    %c0_0 = arith.constant 0 : index
    %0 = vector.load %arg3[%c0, %c0_0] : memref<8x128xf32, #tpu.memory_space<vmem>>, vector<8x128xf32>
    %c0_1 = arith.constant 0 : index
    %c0_2 = arith.constant 0 : index
    %c0_3 = arith.constant 0 : index
    %1 = vector.load %arg1[%c0_1, %c0_2, %c0_3] : memref<10x128x128xf32, #tpu.memory_space<vmem>>, vector<1x128x128xf32>
    %2 = vector.shape_cast %1 : vector<1x128x128xf32> to vector<128x128xf32>
    %cst = arith.constant dense<0.000000e+00> : vector<8x128xf32>
    %3 = tpu.matmul %0, %2, %cst {dimension_numbers = #tpu.dot_dimension_numbers<[1], [0], [0], [1], [0, 0, 1, 1], [], []>} : vector<8x128xf32>, vector<128x128xf32>, vector<8x128xf32> -> vector<8x128xf32>
    %c0_4 = arith.constant 0 : index
    %c0_5 = arith.constant 0 : index
    %c0_6 = arith.constant 0 : index
    %4 = vector.load %arg2[%c0_4, %c0_5, %c0_6] : memref<5x1x128xf32, #tpu.memory_space<vmem>>, vector<1x1x128xf32>
    %5 = vector.shape_cast %4 : vector<1x1x128xf32> to vector<1x128xf32>
    %6 = vector.broadcast %5 : vector<1x128xf32> to vector<8x128xf32>
    %7 = arith.addf %3, %6 : vector<8x128xf32>
    %cst_7 = arith.constant 0.00999999977 : f32
    %8 = vector.broadcast %cst_7 : f32 to vector<8x128xf32>
    %9 = arith.mulf %8, %7 : vector<8x128xf32>
    %10 = arith.maximumf %7, %9 : vector<8x128xf32>
    %c1 = arith.constant 1 : index
    %c0_8 = arith.constant 0 : index
    %c0_9 = arith.constant 0 : index
    %11 = vector.load %arg1[%c1, %c0_8, %c0_9] : memref<10x128x128xf32, #tpu.memory_space<vmem>>, vector<1x128x128xf32>
    %12 = vector.shape_cast %11 : vector<1x128x128xf32> to vector<128x128xf32>
    %cst_10 = arith.constant dense<0.000000e+00> : vector<8x128xf32>
    %13 = tpu.matmul %10, %12, %cst_10 {dimension_numbers = #tpu.dot_dimension_numbers<[1], [0], [0], [1], [0, 0, 1, 1], [], []>} : vector<8x128xf32>, vector<128x128xf32>, vector<8x128xf32> -> vector<8x128xf32>
    %c1_11 = arith.constant 1 : index
    %c0_12 = arith.constant 0 : index
    %c0_13 = arith.constant 0 : index
    %14 = vector.load %arg2[%c1_11, %c0_12, %c0_13] : memref<5x1x128xf32, #tpu.memory_space<vmem>>, vector<1x1x128xf32>
    %15 = vector.shape_cast %14 : vector<1x1x128xf32> to vector<1x128xf32>
    %16 = vector.broadcast %15 : vector<1x128xf32> to vector<8x128xf32>
    %17 = arith.addf %13, %16 : vector<8x128xf32>
    %cst_14 = arith.constant 0.00999999977 : f32
    %18 = vector.broadcast %cst_14 : f32 to vector<8x128xf32>
    %19 = arith.mulf %18, %17 : vector<8x128xf32>
    %20 = arith.maximumf %17, %19 : vector<8x128xf32>
    %c2 = arith.constant 2 : index
    %c0_15 = arith.constant 0 : index
    %c0_16 = arith.constant 0 : index
    %21 = vector.load %arg1[%c2, %c0_15, %c0_16] : memref<10x128x128xf32, #tpu.memory_space<vmem>>, vector<1x128x128xf32>
    %22 = vector.shape_cast %21 : vector<1x128x128xf32> to vector<128x128xf32>
    %cst_17 = arith.constant dense<0.000000e+00> : vector<8x128xf32>
    %23 = tpu.matmul %20, %22, %cst_17 {dimension_numbers = #tpu.dot_dimension_numbers<[1], [0], [0], [1], [0, 0, 1, 1], [], []>} : vector<8x128xf32>, vector<128x128xf32>, vector<8x128xf32> -> vector<8x128xf32>
    %c2_18 = arith.constant 2 : index
    %c0_19 = arith.constant 0 : index
    %c0_20 = arith.constant 0 : index
    %24 = vector.load %arg2[%c2_18, %c0_19, %c0_20] : memref<5x1x128xf32, #tpu.memory_space<vmem>>, vector<1x1x128xf32>
    %25 = vector.shape_cast %24 : vector<1x1x128xf32> to vector<1x128xf32>
    %26 = vector.broadcast %25 : vector<1x128xf32> to vector<8x128xf32>
    %27 = arith.addf %23, %26 : vector<8x128xf32>
    %cst_21 = arith.constant 0.00999999977 : f32
    %28 = vector.broadcast %cst_21 : f32 to vector<8x128xf32>
    %29 = arith.mulf %28, %27 : vector<8x128xf32>
    %30 = arith.maximumf %27, %29 : vector<8x128xf32>
    %c3 = arith.constant 3 : index
    %c0_22 = arith.constant 0 : index
    %c0_23 = arith.constant 0 : index
    %31 = vector.load %arg1[%c3, %c0_22, %c0_23] : memref<10x128x128xf32, #tpu.memory_space<vmem>>, vector<1x128x128xf32>
    %32 = vector.shape_cast %31 : vector<1x128x128xf32> to vector<128x128xf32>
    %cst_24 = arith.constant dense<0.000000e+00> : vector<8x128xf32>
    %33 = tpu.matmul %30, %32, %cst_24 {dimension_numbers = #tpu.dot_dimension_numbers<[1], [0], [0], [1], [0, 0, 1, 1], [], []>} : vector<8x128xf32>, vector<128x128xf32>, vector<8x128xf32> -> vector<8x128xf32>
    %c3_25 = arith.constant 3 : index
    %c0_26 = arith.constant 0 : index
    %c0_27 = arith.constant 0 : index
    %34 = vector.load %arg2[%c3_25, %c0_26, %c0_27] : memref<5x1x128xf32, #tpu.memory_space<vmem>>, vector<1x1x128xf32>
    %35 = vector.shape_cast %34 : vector<1x1x128xf32> to vector<1x128xf32>
    %36 = vector.broadcast %35 : vector<1x128xf32> to vector<8x128xf32>
    %37 = arith.addf %33, %36 : vector<8x128xf32>
    %cst_28 = arith.constant 0.00999999977 : f32
    %38 = vector.broadcast %cst_28 : f32 to vector<8x128xf32>
    %39 = arith.mulf %38, %37 : vector<8x128xf32>
    %40 = arith.maximumf %37, %39 : vector<8x128xf32>
    %c4 = arith.constant 4 : index
    %c0_29 = arith.constant 0 : index
    %c0_30 = arith.constant 0 : index
    %41 = vector.load %arg1[%c4, %c0_29, %c0_30] : memref<10x128x128xf32, #tpu.memory_space<vmem>>, vector<1x128x128xf32>
    %42 = vector.shape_cast %41 : vector<1x128x128xf32> to vector<128x128xf32>
    %cst_31 = arith.constant dense<0.000000e+00> : vector<8x128xf32>
    %43 = tpu.matmul %40, %42, %cst_31 {dimension_numbers = #tpu.dot_dimension_numbers<[1], [0], [0], [1], [0, 0, 1, 1], [], []>} : vector<8x128xf32>, vector<128x128xf32>, vector<8x128xf32> -> vector<8x128xf32>
    %c4_32 = arith.constant 4 : index
    %c0_33 = arith.constant 0 : index
    %c0_34 = arith.constant 0 : index
    %44 = vector.load %arg2[%c4_32, %c0_33, %c0_34] : memref<5x1x128xf32, #tpu.memory_space<vmem>>, vector<1x1x128xf32>
    %45 = vector.shape_cast %44 : vector<1x1x128xf32> to vector<1x128xf32>
    %46 = vector.broadcast %45 : vector<1x128xf32> to vector<8x128xf32>
    %47 = arith.addf %43, %46 : vector<8x128xf32>
    %c5 = arith.constant 5 : index
    %c0_35 = arith.constant 0 : index
    %c0_36 = arith.constant 0 : index
    %48 = vector.load %arg1[%c5, %c0_35, %c0_36] : memref<10x128x128xf32, #tpu.memory_space<vmem>>, vector<1x128x128xf32>
    %49 = vector.shape_cast %48 : vector<1x128x128xf32> to vector<128x128xf32>
    %cst_37 = arith.constant dense<0.000000e+00> : vector<8x128xf32>
    %50 = tpu.matmul %47, %49, %cst_37 {dimension_numbers = #tpu.dot_dimension_numbers<[1], [0], [0], [1], [0, 0, 1, 1], [], []>} : vector<8x128xf32>, vector<128x128xf32>, vector<8x128xf32> -> vector<8x128xf32>
    %cst_38 = arith.constant 0.00999999977 : f32
    %51 = vector.broadcast %cst_38 : f32 to vector<8x128xf32>
    %52 = arith.mulf %51, %50 : vector<8x128xf32>
    %53 = arith.maximumf %50, %52 : vector<8x128xf32>
    %c6 = arith.constant 6 : index
    %c0_39 = arith.constant 0 : index
    %c0_40 = arith.constant 0 : index
    %54 = vector.load %arg1[%c6, %c0_39, %c0_40] : memref<10x128x128xf32, #tpu.memory_space<vmem>>, vector<1x128x128xf32>
    %55 = vector.shape_cast %54 : vector<1x128x128xf32> to vector<128x128xf32>
    %cst_41 = arith.constant dense<0.000000e+00> : vector<8x128xf32>
    %56 = tpu.matmul %53, %55, %cst_41 {dimension_numbers = #tpu.dot_dimension_numbers<[1], [0], [0], [1], [0, 0, 1, 1], [], []>} : vector<8x128xf32>, vector<128x128xf32>, vector<8x128xf32> -> vector<8x128xf32>
    %cst_42 = arith.constant 0.00999999977 : f32
    %57 = vector.broadcast %cst_42 : f32 to vector<8x128xf32>
    %58 = arith.mulf %57, %56 : vector<8x128xf32>
    %59 = arith.maximumf %56, %58 : vector<8x128xf32>
    %c7 = arith.constant 7 : index
    %c0_43 = arith.constant 0 : index
    %c0_44 = arith.constant 0 : index
    %60 = vector.load %arg1[%c7, %c0_43, %c0_44] : memref<10x128x128xf32, #tpu.memory_space<vmem>>, vector<1x128x128xf32>
    %61 = vector.shape_cast %60 : vector<1x128x128xf32> to vector<128x128xf32>
    %cst_45 = arith.constant dense<0.000000e+00> : vector<8x128xf32>
    %62 = tpu.matmul %59, %61, %cst_45 {dimension_numbers = #tpu.dot_dimension_numbers<[1], [0], [0], [1], [0, 0, 1, 1], [], []>} : vector<8x128xf32>, vector<128x128xf32>, vector<8x128xf32> -> vector<8x128xf32>
    %cst_46 = arith.constant 0.00999999977 : f32
    %63 = vector.broadcast %cst_46 : f32 to vector<8x128xf32>
    %64 = arith.mulf %63, %62 : vector<8x128xf32>
    %65 = arith.maximumf %62, %64 : vector<8x128xf32>
    %c8 = arith.constant 8 : index
    %c0_47 = arith.constant 0 : index
    %c0_48 = arith.constant 0 : index
    %66 = vector.load %arg1[%c8, %c0_47, %c0_48] : memref<10x128x128xf32, #tpu.memory_space<vmem>>, vector<1x128x128xf32>
    %67 = vector.shape_cast %66 : vector<1x128x128xf32> to vector<128x128xf32>
    %cst_49 = arith.constant dense<0.000000e+00> : vector<8x128xf32>
    %68 = tpu.matmul %65, %67, %cst_49 {dimension_numbers = #tpu.dot_dimension_numbers<[1], [0], [0], [1], [0, 0, 1, 1], [], []>} : vector<8x128xf32>, vector<128x128xf32>, vector<8x128xf32> -> vector<8x128xf32>
    %cst_50 = arith.constant 0.00999999977 : f32
    %69 = vector.broadcast %cst_50 : f32 to vector<8x128xf32>
    %70 = arith.mulf %69, %68 : vector<8x128xf32>
    %71 = arith.maximumf %68, %70 : vector<8x128xf32>
    %c9 = arith.constant 9 : index
    %c0_51 = arith.constant 0 : index
    %c0_52 = arith.constant 0 : index
    %72 = vector.load %arg1[%c9, %c0_51, %c0_52] : memref<10x128x128xf32, #tpu.memory_space<vmem>>, vector<1x128x128xf32>
    %73 = vector.shape_cast %72 : vector<1x128x128xf32> to vector<128x128xf32>
    %cst_53 = arith.constant dense<0.000000e+00> : vector<8x128xf32>
    %74 = tpu.matmul %71, %73, %cst_53 {dimension_numbers = #tpu.dot_dimension_numbers<[1], [0], [0], [1], [0, 0, 1, 1], [], []>} : vector<8x128xf32>, vector<128x128xf32>, vector<8x128xf32> -> vector<8x128xf32>
    %cst_54 = arith.constant 0.00999999977 : f32
    %75 = vector.broadcast %cst_54 : f32 to vector<8x128xf32>
    %76 = arith.mulf %75, %74 : vector<8x128xf32>
    %77 = arith.maximumf %74, %76 : vector<8x128xf32>
    %c0_55 = arith.constant 0 : index
    %c0_56 = arith.constant 0 : index
    %78 = vector.load %arg4[%c0_55, %c0_56] : memref<8x128xf32, #tpu.memory_space<vmem>>, vector<8x128xf32>
    tpu.vector_store %arg4[%c0_55, %c0_56], %77 {strides = array<i32>} : memref<8x128xf32, #tpu.memory_space<vmem>>, vector<8x128xf32>,
    return
  }
  func.func @transform_0(%arg0: i32) -> (i32, i32, i32) {
    %c0_i32 = arith.constant 0 : i32
    %c0_i32_0 = arith.constant 0 : i32
    %c0_i32_1 = arith.constant 0 : i32
    %c0_i32_2 = arith.constant 0 : i32
    return %c0_i32, %c0_i32_0, %c0_i32_1 : i32, i32, i32
  }
  func.func @transform_1(%arg0: i32) -> (i32, i32, i32) {
    %c0_i32 = arith.constant 0 : i32
    %c0_i32_0 = arith.constant 0 : i32
    %c0_i32_1 = arith.constant 0 : i32
    %c0_i32_2 = arith.constant 0 : i32
    return %c0_i32, %c0_i32_0, %c0_i32_1 : i32, i32, i32
  }
  func.func @transform_2(%arg0: i32) -> (i32, i32) {
    %c0_i32 = arith.constant 0 : i32
    %c0_i32_0 = arith.constant 0 : i32
    return %arg0, %c0_i32 : i32, i32
  }
  func.func @transform_3(%arg0: i32) -> (i32, i32) {
    %c0_i32 = arith.constant 0 : i32
    %c0_i32_0 = arith.constant 0 : i32
    return %arg0, %c0_i32 : i32, i32
  }
}

</mosaic_0001>

<bundles_post_ra>
// kernel: autoencoder_forward.1
= control target key start
LH: loop header
LB: loop body
LE: loop exit
PB: predicated region body
PF: predicated region fallthrough
CT: control target
= control target key end

     0   :  { %8 = vsyncpa [#allocation3], 0  ;;  %s1517_s12 = smov [#allocation2]   ;;  %s1746_s0 = inlined_call_operand.hbm [shape: f32[10,128,128], index: 0, kind: input, shape index: {}]   ;;  %s1747_s1 = inlined_call_operand.vmem [shape: f32[5,1,128], index: 1, kind: input, shape index: {}]   ;;  %s1748_s2 = inlined_call_operand.vmem [shape: f32[8,128], index: 2, kind: input, shape index: {}]   ;;  %s1749_s3 = inlined_call_operand.vmem [shape: f32[8,128], index: 3, kind: output, shape index: {}]  }
   0x1   :  { %s14_s13 = sshll.u32 %s1517_s12, 4  ;;  %s15_s13 = int_to_ptr.vmem [resolvable:$true] %s14_s13 }
   0x2   :  { %s1503_s14 = scalar_lea.vmem %s15_s13, 20480  ;;  %p1508_p1 = scmp.lt.s32.totalorder %s15_s13, %s15_s13 }
   0x3   :  { %p1504_p0 = scmp.ne.s32.totalorder %s15_s13, %s1503_s14  ;;  %p1509_p2 = scmp.lt.s32.totalorder %s1503_s14, %s1503_s14 }
   0x5   :  { %p1510_p3 = por %p1509_p2, %p1508_p1 }
   0x7   :  { %p1511_p4 = pnand %p1510_p3, %p1504_p0 }
   0x9   :  { %1514 = shalt.err (!%p1511_p4)
}
   0xa   :  { %s1518_s15 = smov 128   ;;  %s1519_s16 = smov 8  }
   0xb   :  { %20 = dma.hbm_to_vmem [thread:$0]  %s1746_s0, 20480, %s15_s13, [#allocation3], %s1518_s15, %s1518_s15, %s1519_s16  }
   0xc   :  { %1515 = dma.done.wait [#allocation3], 20480  }
   0xd   :  { %1516 = vsyncadd [#allocation3], 4294946816  ;;  %v1520_v0 = vmov 0.0   ;;  %vm1521_vm0 = vmmov 0   ;;  %v44_v1 = vld [vmem:[#allocation2 + $0x78] sm:$0xff]  ;;  %v43_v2 = vld [vmem:[#allocation2 + $0x70] sm:$0xff] }
   0xe   :  { %1140 = vmatprep.subr.mxu0 %v1520_v0  ;;  %1172 = vmatprep.mubr.msk.f32.mxu0 %vm1521_vm0, %v1520_v0  ;;  %v42_v3 = vld [vmem:[#allocation2 + $0x68] sm:$0xff]  ;;  %v41_v4 = vld [vmem:[#allocation2 + $0x60] sm:$0xff]  ;;  %v140_v5 = vld [vmem:[#allocation2 + $0xf8] sm:$0xff] }
   0xf   :  { %1175 = vmatprep.subr.mxu1 %v1520_v0  ;;  %1207 = vmatprep.mubr.msk.f32.mxu1 %vm1521_vm0, %v1520_v0  ;;  %v40_v6 = vld [vmem:[#allocation2 + $0x58] sm:$0xff]  ;;  %v139_v7 = vld [vmem:[#allocation2 + $0xf0] sm:$0xff]  ;;  %v138_v8 = vld [vmem:[#allocation2 + $0xe8] sm:$0xff] }
  0x10   :  { %1141 = vmatpush3.msra.mxu0 %v44_v1  ;;  %1176 = vmatpush3.msra.mxu1 %v140_v5  ;;  %v39_v9 = vld [vmem:[#allocation2 + $0x50] sm:$0xff]  ;;  %v137_v10 = vld [vmem:[#allocation2 + $0xe0] sm:$0xff]  ;;  %v38_v11 = vld [vmem:[#allocation2 + $0x48] sm:$0xff] }
  0x11   :  { %1142 = vmatprep.subr.mxu0 %v1520_v0  ;;  %1177 = vmatprep.subr.mxu1 %v1520_v0  ;;  %v136_v12 = vld [vmem:[#allocation2 + $0xd8] sm:$0xff]  ;;  %v37_v13 = vld [vmem:[#allocation2 + $0x40] sm:$0xff]  ;;  %v135_v14 = vld [vmem:[#allocation2 + $0xd0] sm:$0xff] }
  0x12   :  { %1143 = vmatpush3.msra.mxu0 %v43_v2  ;;  %1178 = vmatpush3.msra.mxu1 %v139_v7  ;;  %v36_v15 = vld [vmem:[#allocation2 + $0x38] sm:$0xff]  ;;  %v134_v16 = vld [vmem:[#allocation2 + $0xc8] sm:$0xff]  ;;  %v35_v17 = vld [vmem:[#allocation2 + $0x30] sm:$0xff] }
  0x13   :  { %1144 = vmatprep.subr.mxu0 %v1520_v0  ;;  %1179 = vmatprep.subr.mxu1 %v1520_v0  ;;  %v133_v18 = vld [vmem:[#allocation2 + $0xc0] sm:$0xff]  ;;  %v34_v19 = vld [vmem:[#allocation2 + $0x28] sm:$0xff]  ;;  %v132_v20 = vld [vmem:[#allocation2 + $0xb8] sm:$0xff] }
  0x14   :  { %1145 = vmatpush3.msra.mxu0 %v42_v3  ;;  %1180 = vmatpush3.msra.mxu1 %v138_v8  ;;  %v33_v21 = vld [vmem:[#allocation2 + $0x20] sm:$0xff]  ;;  %v131_v22 = vld [vmem:[#allocation2 + $0xb0] sm:$0xff]  ;;  %v32_v23 = vld [vmem:[#allocation2 + $0x18] sm:$0xff] }
  0x15   :  { %1146 = vmatprep.subr.mxu0 %v1520_v0  ;;  %1181 = vmatprep.subr.mxu1 %v1520_v0  ;;  %v130_v24 = vld [vmem:[#allocation2 + $0xa8] sm:$0xff]  ;;  %v31_v25 = vld [vmem:[#allocation2 + $0x10] sm:$0xff]  ;;  %v129_v26 = vld [vmem:[#allocation2 + $0xa0] sm:$0xff] }
  0x16   :  { %1147 = vmatpush3.msra.mxu0 %v41_v4  ;;  %1182 = vmatpush3.msra.mxu1 %v137_v10  ;;  %v30_v27 = vld [vmem:[#allocation2 + $0x8] sm:$0xff]  ;;  %v29_v28 = vld [vmem:[#allocation2] sm:$0xff]  ;;  %v128_v30 = vld [vmem:[#allocation2 + $0x98] sm:$0xff] }
  0x17   :  { %1148 = vmatprep.subr.mxu0 %v1520_v0  ;;  %1183 = vmatprep.subr.mxu1 %v1520_v0  ;;  %v28_v29 = vld [vmem:[%s1748_s2] sm:$0xff]  ;;  %v127_v31 = vld [vmem:[#allocation2 + $0x90] sm:$0xff]  ;;  %v126_v32 = vld [vmem:[#allocation2 + $0x88] sm:$0xff] }
  0x18   :  { %1149 = vmatpush3.msra.mxu0 %v40_v6  ;;  %1184 = vmatpush3.msra.mxu1 %v136_v12  ;;  %v125_v33 = vld [vmem:[#allocation2 + $0x80] sm:$0xff]  ;;  %v237_v34 = vld [vmem:[#allocation2 + $0x178] sm:$0xff]  ;;  %v236_v35 = vld [vmem:[#allocation2 + $0x170] sm:$0xff] }
  0x19   :  { %1150 = vmatprep.subr.mxu0 %v1520_v0  ;;  %1185 = vmatprep.subr.mxu1 %v1520_v0  ;;  %v235_v36 = vld [vmem:[#allocation2 + $0x168] sm:$0xff]  ;;  %v234_v37 = vld [vmem:[#allocation2 + $0x160] sm:$0xff]  ;;  %v233_v38 = vld [vmem:[#allocation2 + $0x158] sm:$0xff] }
  0x1a   :  { %1151 = vmatpush3.msra.mxu0 %v39_v9  ;;  %1186 = vmatpush3.msra.mxu1 %v135_v14  ;;  %v232_v39 = vld [vmem:[#allocation2 + $0x150] sm:$0xff]  ;;  %v231_v40 = vld [vmem:[#allocation2 + $0x148] sm:$0xff]  ;;  %v230_v41 = vld [vmem:[#allocation2 + $0x140] sm:$0xff] }
  0x1b   :  { %1152 = vmatprep.subr.mxu0 %v1520_v0  ;;  %1187 = vmatprep.subr.mxu1 %v1520_v0  ;;  %v229_v42 = vld [vmem:[#allocation2 + $0x138] sm:$0xff]  ;;  %v228_v43 = vld [vmem:[#allocation2 + $0x130] sm:$0xff]  ;;  %v227_v44 = vld [vmem:[#allocation2 + $0x128] sm:$0xff] }
  0x1c   :  { %1153 = vmatpush3.msra.mxu0 %v38_v11  ;;  %1188 = vmatpush3.msra.mxu1 %v134_v16  ;;  %v226_v45 = vld [vmem:[#allocation2 + $0x120] sm:$0xff]  ;;  %v225_v52 = vld [vmem:[#allocation2 + $0x118] sm:$0xff]  ;;  %v224_v53 = vld [vmem:[#allocation2 + $0x110] sm:$0xff] }
  0x1d   :  { %1154 = vmatprep.subr.mxu0 %v1520_v0  ;;  %1189 = vmatprep.subr.mxu1 %v1520_v0  ;;  %v961_v46 = vld [vmem:[%s1747_s1] ss:$0 sm:$0xff]  ;;  %v223_v54 = vld [vmem:[#allocation2 + $0x108] sm:$0xff]  ;;  %v334_v56 = vld [vmem:[#allocation2 + $0x1f8] sm:$0xff] }
  0x1e   :  { %1155 = vmatpush3.msra.mxu0 %v37_v13  ;;  %1190 = vmatpush3.msra.mxu1 %v133_v18  ;;  %v222_v55 = vld [vmem:[#allocation2 + $0x100] sm:$0xff]  ;;  %v333_v57 = vld [vmem:[#allocation2 + $0x1f0] sm:$0xff]  ;;  %v332_v58 = vld [vmem:[#allocation2 + $0x1e8] sm:$0xff] }
  0x1f   :  { %1156 = vmatprep.subr.mxu0 %v1520_v0  ;;  %1191 = vmatprep.subr.mxu1 %v1520_v0  ;;  %v331_v59 = vld [vmem:[#allocation2 + $0x1e0] sm:$0xff]  ;;  %v330_v60 = vld [vmem:[#allocation2 + $0x1d8] sm:$0xff]  ;;  %v329_v61 = vld [vmem:[#allocation2 + $0x1d0] sm:$0xff] }
  0x20   :  { %1157 = vmatpush3.msra.mxu0 %v36_v15  ;;  %1192 = vmatpush3.msra.mxu1 %v132_v20  ;;  %v328_v62 = vld [vmem:[#allocation2 + $0x1c8] sm:$0xff]  ;;  %v327_v63 = vld [vmem:[#allocation2 + $0x1c0] sm:$0xff]  ;;  %v326_v1 = vld [vmem:[#allocation2 + $0x1b8] sm:$0xff] }
  0x21   :  { %1158 = vmatprep.subr.mxu0 %v1520_v0  ;;  %1193 = vmatprep.subr.mxu1 %v1520_v0  ;;  %v325_v2 = vld [vmem:[#allocation2 + $0x1b0] sm:$0xff]  ;;  %v324_v3 = vld [vmem:[#allocation2 + $0x1a8] sm:$0xff]  ;;  %v323_v4 = vld [vmem:[#allocation2 + $0x1a0] sm:$0xff] }
  0x22   :  { %1159 = vmatpush3.msra.mxu0 %v35_v17  ;;  %1194 = vmatpush3.msra.mxu1 %v131_v22  ;;  %v963_v5 = vld [vmem:[%s1747_s1 + $0x1] ss:$0 sm:$0xff]  ;;  %v322_v11 = vld [vmem:[#allocation2 + $0x198] sm:$0xff]  ;;  %v321_v12 = vld [vmem:[#allocation2 + $0x190] sm:$0xff] }
  0x23   :  { %1160 = vmatprep.subr.mxu0 %v1520_v0  ;;  %1195 = vmatprep.subr.mxu1 %v1520_v0  ;;  %v320_v13 = vld [vmem:[#allocation2 + $0x188] sm:$0xff]  ;;  %v319_v14 = vld [vmem:[#allocation2 + $0x180] sm:$0xff]  ;;  %v431_v15 = vld [vmem:[#allocation2 + $0x278] sm:$0xff] }
  0x24   :  { %1161 = vmatpush3.msra.mxu0 %v34_v19  ;;  %1196 = vmatpush3.msra.mxu1 %v130_v24  ;;  %v430_v16 = vld [vmem:[#allocation2 + $0x270] sm:$0xff]  ;;  %v429_v17 = vld [vmem:[#allocation2 + $0x268] sm:$0xff]  ;;  %v428_v18 = vld [vmem:[#allocation2 + $0x260] sm:$0xff] }
  0x25   :  { %1162 = vmatprep.subr.mxu0 %v1520_v0  ;;  %1197 = vmatprep.subr.mxu1 %v1520_v0  ;;  %v427_v19 = vld [vmem:[#allocation2 + $0x258] sm:$0xff]  ;;  %v426_v20 = vld [vmem:[#allocation2 + $0x250] sm:$0xff]  ;;  %v424_v22 = vld [vmem:[#allocation2 + $0x240] sm:$0xff] }
  0x26   :  { %1163 = vmatpush3.msra.mxu0 %v33_v21  ;;  %1198 = vmatpush3.msra.mxu1 %v129_v26  ;;  %v425_v21 = vld [vmem:[#allocation2 + $0x248] sm:$0xff]  ;;  %v422_v24 = vld [vmem:[#allocation2 + $0x230] sm:$0xff]  ;;  %v420_v26 = vld [vmem:[#allocation2 + $0x220] sm:$0xff] }
  0x27   :  { %1164 = vmatprep.subr.mxu0 %v1520_v0  ;;  %1199 = vmatprep.subr.mxu1 %v1520_v0 }
  0x28   :  { %1165 = vmatpush3.msra.mxu0 %v32_v23  ;;  %1200 = vmatpush3.msra.mxu1 %v128_v30  ;;  %v423_v23 = vld [vmem:[#allocation2 + $0x238] sm:$0xff] }
  0x29   :  { %1166 = vmatprep.subr.mxu0 %v1520_v0  ;;  %1201 = vmatprep.subr.mxu1 %v1520_v0 }
  0x2a   :  { %1167 = vmatpush3.msra.mxu0 %v31_v25  ;;  %1202 = vmatpush3.msra.mxu1 %v127_v31  ;;  %v421_v25 = vld [vmem:[#allocation2 + $0x228] sm:$0xff] }
  0x2b   :  { %1168 = vmatprep.subr.mxu0 %v1520_v0  ;;  %1203 = vmatprep.subr.mxu1 %v1520_v0 }
  0x2c   :  { %1169 = vmatpush3.msra.mxu0 %v30_v27  ;;  %1204 = vmatpush3.msra.mxu1 %v126_v32  ;;  %v965_v27 = vld [vmem:[%s1747_s1 + $0x2] ss:$0 sm:$0xff] }
  0x2d   :  { %1170 = vmatprep.subr.mxu0 %v1520_v0  ;;  %1205 = vmatprep.subr.mxu1 %v1520_v0 }
  0x2e   :  { %1171 = vmatpush3.msra.mxu0 %v29_v28  ;;  %1206 = vmatpush3.msra.mxu1 %v125_v33  ;;  %v419_v33 = vld [vmem:[#allocation2 + $0x218] sm:$0xff] }
  0x2f   :  { %1173 = vmatmul.mubr.f32.vlgmr.msra.gmra.mxu0 %v28_v29  ;;  %1210 = vmatprep.subr.mxu0 %v1520_v0 }
  0x30   :  { %1242 = vmatprep.mubr.msk.f32.mxu0 %vm1521_vm0, %v1520_v0  ;;  %1245 = vmatprep.subr.mxu1 %v1520_v0 }
  0x31   :  { %1211 = vmatpush3.msra.mxu0 %v237_v34  ;;  %v418_v34 = vld [vmem:[#allocation2 + $0x210] sm:$0xff] }
  0x32   :  { %1212 = vmatprep.subr.mxu0 %v1520_v0 }
  0x33   :  { %1213 = vmatpush3.msra.mxu0 %v236_v35  ;;  %v417_v35 = vld [vmem:[#allocation2 + $0x208] sm:$0xff] }
  0x34   :  { %1214 = vmatprep.subr.mxu0 %v1520_v0 }
  0x35   :  { %1215 = vmatpush3.msra.mxu0 %v235_v36  ;;  %v416_v36 = vld [vmem:[#allocation2 + $0x200] sm:$0xff] }
  0x36   :  { %1216 = vmatprep.subr.mxu0 %v1520_v0 }
  0x37   :  { %1217 = vmatpush3.msra.mxu0 %v234_v37  ;;  %v526_v37 = vld [vmem:[#allocation2 + $0x2f8] sm:$0xff] }
  0x38   :  { %1218 = vmatprep.subr.mxu0 %v1520_v0 }
  0x39   :  { %1219 = vmatpush3.msra.mxu0 %v233_v38  ;;  %v525_v38 = vld [vmem:[#allocation2 + $0x2f0] sm:$0xff] }
  0x3a   :  { %1220 = vmatprep.subr.mxu0 %v1520_v0 }
  0x3b   :  { %1221 = vmatpush3.msra.mxu0 %v232_v39  ;;  %v524_v39 = vld [vmem:[#allocation2 + $0x2e8] sm:$0xff] }
  0x3c   :  { %1222 = vmatprep.subr.mxu0 %v1520_v0 }
  0x3d   :  { %1223 = vmatpush3.msra.mxu0 %v231_v40  ;;  %v523_v40 = vld [vmem:[#allocation2 + $0x2e0] sm:$0xff] }
  0x3e   :  { %1224 = vmatprep.subr.mxu0 %v1520_v0 }
  0x3f   :  { %1225 = vmatpush3.msra.mxu0 %v230_v41  ;;  %v522_v41 = vld [vmem:[#allocation2 + $0x2d8] sm:$0xff] }
  0x40   :  { %1226 = vmatprep.subr.mxu0 %v1520_v0 }
  0x41   :  { %1227 = vmatpush3.msra.mxu0 %v229_v42  ;;  %v521_v42 = vld [vmem:[#allocation2 + $0x2d0] sm:$0xff] }
  0x42   :  { %1228 = vmatprep.subr.mxu0 %v1520_v0 }
  0x43   :  { %1229 = vmatpush3.msra.mxu0 %v228_v43  ;;  %v520_v43 = vld [vmem:[#allocation2 + $0x2c8] sm:$0xff] }
  0x44   :  { %1230 = vmatprep.subr.mxu0 %v1520_v0 }
  0x45   :  { %1231 = vmatpush3.msra.mxu0 %v227_v44  ;;  %v519_v44 = vld [vmem:[#allocation2 + $0x2c0] sm:$0xff] }
  0x46   :  { %1232 = vmatprep.subr.mxu0 %v1520_v0 }
  0x47   :  { %1233 = vmatpush3.msra.mxu0 %v226_v45  ;;  %v518_v45 = vld [vmem:[#allocation2 + $0x2b8] sm:$0xff] }
  0x48   :  { %1234 = vmatprep.subr.mxu0 %v1520_v0 }
  0x49   :  { %1235 = vmatpush3.msra.mxu0 %v225_v52 }
  0x4a   :  { %1236 = vmatprep.subr.mxu0 %v1520_v0 }
  0x4b   :  { %1237 = vmatpush3.msra.mxu0 %v224_v53 }
  0x4c   :  { %1238 = vmatprep.subr.mxu0 %v1520_v0 }
  0x4d   :  { %1239 = vmatpush3.msra.mxu0 %v223_v54 }
  0x4e   :  { %1240 = vmatprep.subr.mxu0 %v1520_v0 }
  0x4f   :  { %1241 = vmatpush3.msra.mxu0 %v222_v55 }
  0x50   :  { %1280 = vmatprep.subr.mxu0 %v1520_v0 }
  0xef   :  { %v118_v47 = vpop.f32.mrf.mxu0 }
  0xf0   :  { %v119_v48 = vadd.f32 %v961_v46, %v118_v47  ;;  %v517_v46 = vld [vmem:[#allocation2 + $0x2b0] sm:$0xff]  ;;  %v516_v47 = vld [vmem:[#allocation2 + $0x2a8] sm:$0xff] }
  0xf1   :  { %v1174_v49 = vpop.f32.mrf.mxu0 }
  0xf2   :  { %v122_v50 = vmul.f32 0.01, %v119_v48  ;;  %v514_v49 = vld [vmem:[#allocation2 + $0x298] sm:$0xff] }
  0xf4   :  { %v123_v51 = vmax.f32 %v119_v48, %v122_v50  ;;  %v515_v48 = vld [vmem:[#allocation2 + $0x2a0] sm:$0xff]  ;;  %v513_v50 = vld [vmem:[#allocation2 + $0x290] sm:$0xff] }
  0xf6   :  { %1208 = vmatmul.mubr.f32.vlgmr.msra.gmra.mxu1 %v123_v51  ;;  %v967_v51 = vld [vmem:[%s1747_s1 + $0x3] ss:$0 sm:$0xff] }
  0xf7   :  { %1277 = vmatprep.mubr.msk.f32.mxu1 %vm1521_vm0, %v1520_v0  ;;  %1246 = vmatpush3.msra.mxu1 %v334_v56 }
  0xf8   :  { %1247 = vmatprep.subr.mxu1 %v1520_v0 }
  0xf9   :  { %1248 = vmatpush3.msra.mxu1 %v333_v57  ;;  %v512_v57 = vld [vmem:[#allocation2 + $0x288] sm:$0xff] }
  0xfa   :  { %1249 = vmatprep.subr.mxu1 %v1520_v0 }
  0xfb   :  { %1250 = vmatpush3.msra.mxu1 %v332_v58  ;;  %v511_v58 = vld [vmem:[#allocation2 + $0x280] sm:$0xff] }
  0xfc   :  { %1251 = vmatprep.subr.mxu1 %v1520_v0 }
  0xfd   :  { %1252 = vmatpush3.msra.mxu1 %v331_v59  ;;  %v615_v59 = vld [vmem:[#allocation2 + $0x378] sm:$0xff] }
  0xfe   :  { %1253 = vmatprep.subr.mxu1 %v1520_v0 }
  0xff   :  { %1254 = vmatpush3.msra.mxu1 %v330_v60  ;;  %v614_v60 = vld [vmem:[#allocation2 + $0x370] sm:$0xff] }
 0x100   :  { %1255 = vmatprep.subr.mxu1 %v1520_v0 }
 0x101   :  { %1256 = vmatpush3.msra.mxu1 %v329_v61  ;;  %v613_v61 = vld [vmem:[#allocation2 + $0x368] sm:$0xff] }
 0x102   :  { %1257 = vmatprep.subr.mxu1 %v1520_v0 }
 0x103   :  { %1258 = vmatpush3.msra.mxu1 %v328_v62  ;;  %v612_v62 = vld [vmem:[#allocation2 + $0x360] sm:$0xff] }
 0x104   :  { %1259 = vmatprep.subr.mxu1 %v1520_v0 }
 0x105   :  { %1260 = vmatpush3.msra.mxu1 %v327_v63  ;;  %v611_v63 = vld [vmem:[#allocation2 + $0x358] sm:$0xff] }
 0x106   :  { %1261 = vmatprep.subr.mxu1 %v1520_v0 }
 0x107   :  { %1262 = vmatpush3.msra.mxu1 %v326_v1  ;;  %v610_v1 = vld [vmem:[#allocation2 + $0x350] sm:$0xff] }
 0x108   :  { %1263 = vmatprep.subr.mxu1 %v1520_v0 }
 0x109   :  { %1264 = vmatpush3.msra.mxu1 %v325_v2  ;;  %v609_v2 = vld [vmem:[#allocation2 + $0x348] sm:$0xff] }
 0x10a   :  { %1265 = vmatprep.subr.mxu1 %v1520_v0 }
 0x10b   :  { %1266 = vmatpush3.msra.mxu1 %v324_v3  ;;  %v608_v3 = vld [vmem:[#allocation2 + $0x340] sm:$0xff] }
 0x10c   :  { %1267 = vmatprep.subr.mxu1 %v1520_v0 }
 0x10d   :  { %1268 = vmatpush3.msra.mxu1 %v323_v4  ;;  %v607_v4 = vld [vmem:[#allocation2 + $0x338] sm:$0xff] }
 0x10e   :  { %1269 = vmatprep.subr.mxu1 %v1520_v0 }
 0x10f   :  { %1270 = vmatpush3.msra.mxu1 %v322_v11 }
 0x110   :  { %1271 = vmatprep.subr.mxu1 %v1520_v0 }
 0x111   :  { %1272 = vmatpush3.msra.mxu1 %v321_v12 }
 0x112   :  { %1273 = vmatprep.subr.mxu1 %v1520_v0 }
 0x113   :  { %1274 = vmatpush3.msra.mxu1 %v320_v13  ;;  %v602_v13 = vld [vmem:[#allocation2 + $0x310] sm:$0xff] }
 0x114   :  { %1275 = vmatprep.subr.mxu1 %v1520_v0 }
 0x115   :  { %1276 = vmatpush3.msra.mxu1 %v319_v14  ;;  %v601_v14 = vld [vmem:[#allocation2 + $0x308] sm:$0xff] }
 0x116   :  { %1315 = vmatprep.subr.mxu1 %v1520_v0 }
 0x1b6   :  { %v215_v6 = vpop.f32.mrf.mxu1 }
 0x1b7   :  { %v216_v7 = vadd.f32 %v963_v5, %v215_v6  ;;  %v606_v5 = vld [vmem:[#allocation2 + $0x330] sm:$0xff]  ;;  %v605_v6 = vld [vmem:[#allocation2 + $0x328] sm:$0xff] }
 0x1b8   :  { %v1209_v8 = vpop.f32.mrf.mxu1 }
 0x1b9   :  { %v219_v9 = vmul.f32 0.01, %v216_v7  ;;  %v603_v8 = vld [vmem:[#allocation2 + $0x318] sm:$0xff] }
 0x1bb   :  { %v220_v10 = vmax.f32 %v216_v7, %v219_v9  ;;  %v604_v7 = vld [vmem:[#allocation2 + $0x320] sm:$0xff] }
 0x1bc   :  { %v969_v9 = vld [vmem:[%s1747_s1 + $0x4] ss:$0 sm:$0xff] }
 0x1bd   :  { %1243 = vmatmul.mubr.f32.vlgmr.msra.gmra.mxu0 %v220_v10 }
 0x1be   :  { %1312 = vmatprep.mubr.msk.f32.mxu0 %vm1521_vm0, %v1520_v0  ;;  %1281 = vmatpush3.msra.mxu0 %v431_v15  ;;  %v600_v15 = vld [vmem:[#allocation2 + $0x300] sm:$0xff] }
 0x1bf   :  { %1282 = vmatprep.subr.mxu0 %v1520_v0 }
 0x1c0   :  { %1283 = vmatpush3.msra.mxu0 %v430_v16  ;;  %v704_v16 = vld [vmem:[#allocation2 + $0x3f8] sm:$0xff] }
 0x1c1   :  { %1284 = vmatprep.subr.mxu0 %v1520_v0 }
 0x1c2   :  { %1285 = vmatpush3.msra.mxu0 %v429_v17  ;;  %v703_v17 = vld [vmem:[#allocation2 + $0x3f0] sm:$0xff] }
 0x1c3   :  { %1286 = vmatprep.subr.mxu0 %v1520_v0 }
 0x1c4   :  { %1287 = vmatpush3.msra.mxu0 %v428_v18  ;;  %v702_v18 = vld [vmem:[#allocation2 + $0x3e8] sm:$0xff] }
 0x1c5   :  { %1288 = vmatprep.subr.mxu0 %v1520_v0 }
 0x1c6   :  { %1289 = vmatpush3.msra.mxu0 %v427_v19  ;;  %v701_v19 = vld [vmem:[#allocation2 + $0x3e0] sm:$0xff] }
 0x1c7   :  { %1290 = vmatprep.subr.mxu0 %v1520_v0 }
 0x1c8   :  { %1291 = vmatpush3.msra.mxu0 %v426_v20  ;;  %v700_v20 = vld [vmem:[#allocation2 + $0x3d8] sm:$0xff] }
 0x1c9   :  { %1292 = vmatprep.subr.mxu0 %v1520_v0 }
 0x1ca   :  { %1293 = vmatpush3.msra.mxu0 %v425_v21  ;;  %v699_v21 = vld [vmem:[#allocation2 + $0x3d0] sm:$0xff] }
 0x1cb   :  { %1294 = vmatprep.subr.mxu0 %v1520_v0 }
 0x1cc   :  { %1295 = vmatpush3.msra.mxu0 %v424_v22  ;;  %v698_v22 = vld [vmem:[#allocation2 + $0x3c8] sm:$0xff] }
 0x1cd   :  { %1296 = vmatprep.subr.mxu0 %v1520_v0 }
 0x1ce   :  { %1297 = vmatpush3.msra.mxu0 %v423_v23  ;;  %v697_v23 = vld [vmem:[#allocation2 + $0x3c0] sm:$0xff] }
 0x1cf   :  { %1298 = vmatprep.subr.mxu0 %v1520_v0 }
 0x1d0   :  { %1299 = vmatpush3.msra.mxu0 %v422_v24  ;;  %v696_v24 = vld [vmem:[#allocation2 + $0x3b8] sm:$0xff] }
 0x1d1   :  { %1300 = vmatprep.subr.mxu0 %v1520_v0 }
 0x1d2   :  { %1301 = vmatpush3.msra.mxu0 %v421_v25  ;;  %v695_v25 = vld [vmem:[#allocation2 + $0x3b0] sm:$0xff] }
 0x1d3   :  { %1302 = vmatprep.subr.mxu0 %v1520_v0 }
 0x1d4   :  { %1303 = vmatpush3.msra.mxu0 %v420_v26  ;;  %v694_v26 = vld [vmem:[#allocation2 + $0x3a8] sm:$0xff] }
 0x1d5   :  { %1304 = vmatprep.subr.mxu0 %v1520_v0 }
 0x1d6   :  { %1305 = vmatpush3.msra.mxu0 %v419_v33  ;;  %v691_v33 = vld [vmem:[#allocation2 + $0x390] sm:$0xff] }
 0x1d7   :  { %1306 = vmatprep.subr.mxu0 %v1520_v0 }
 0x1d8   :  { %1307 = vmatpush3.msra.mxu0 %v418_v34  ;;  %v690_v34 = vld [vmem:[#allocation2 + $0x388] sm:$0xff] }
 0x1d9   :  { %1308 = vmatprep.subr.mxu0 %v1520_v0 }
 0x1da   :  { %1309 = vmatpush3.msra.mxu0 %v417_v35  ;;  %v689_v35 = vld [vmem:[#allocation2 + $0x380] sm:$0xff] }
 0x1db   :  { %1310 = vmatprep.subr.mxu0 %v1520_v0 }
 0x1dc   :  { %1311 = vmatpush3.msra.mxu0 %v416_v36  ;;  %v793_v36 = vld [vmem:[#allocation2 + $0x478] sm:$0xff] }
 0x1dd   :  { %1350 = vmatprep.subr.mxu0 %v1520_v0 }
 0x27d   :  { %v312_v28 = vpop.f32.mrf.mxu0 }
 0x27e   :  { %v313_v29 = vadd.f32 %v965_v27, %v312_v28  ;;  %v693_v27 = vld [vmem:[#allocation2 + $0x3a0] sm:$0xff]  ;;  %v692_v28 = vld [vmem:[#allocation2 + $0x398] sm:$0xff] }
 0x27f   :  { %v1244_v30 = vpop.f32.mrf.mxu0 }
 0x280   :  { %v316_v31 = vmul.f32 0.01, %v313_v29 }
 0x282   :  { %v317_v32 = vmax.f32 %v313_v29, %v316_v31 }
 0x284   :  { %1278 = vmatmul.mubr.f32.vlgmr.msra.gmra.mxu1 %v317_v32 }
 0x285   :  { %1347 = vmatprep.mubr.msk.f32.mxu1 %vm1521_vm0, %v1520_v0  ;;  %1316 = vmatpush3.msra.mxu1 %v526_v37  ;;  %v792_v37 = vld [vmem:[#allocation2 + $0x470] sm:$0xff] }
 0x286   :  { %1317 = vmatprep.subr.mxu1 %v1520_v0 }
 0x287   :  { %1318 = vmatpush3.msra.mxu1 %v525_v38  ;;  %v791_v38 = vld [vmem:[#allocation2 + $0x468] sm:$0xff] }
 0x288   :  { %1319 = vmatprep.subr.mxu1 %v1520_v0 }
 0x289   :  { %1320 = vmatpush3.msra.mxu1 %v524_v39  ;;  %v790_v39 = vld [vmem:[#allocation2 + $0x460] sm:$0xff] }
 0x28a   :  { %1321 = vmatprep.subr.mxu1 %v1520_v0 }
 0x28b   :  { %1322 = vmatpush3.msra.mxu1 %v523_v40  ;;  %v789_v40 = vld [vmem:[#allocation2 + $0x458] sm:$0xff] }
 0x28c   :  { %1323 = vmatprep.subr.mxu1 %v1520_v0 }
 0x28d   :  { %1324 = vmatpush3.msra.mxu1 %v522_v41  ;;  %v788_v41 = vld [vmem:[#allocation2 + $0x450] sm:$0xff] }
 0x28e   :  { %1325 = vmatprep.subr.mxu1 %v1520_v0 }
 0x28f   :  { %1326 = vmatpush3.msra.mxu1 %v521_v42  ;;  %v787_v42 = vld [vmem:[#allocation2 + $0x448] sm:$0xff] }
 0x290   :  { %1327 = vmatprep.subr.mxu1 %v1520_v0 }
 0x291   :  { %1328 = vmatpush3.msra.mxu1 %v520_v43  ;;  %v786_v43 = vld [vmem:[#allocation2 + $0x440] sm:$0xff] }
 0x292   :  { %1329 = vmatprep.subr.mxu1 %v1520_v0 }
 0x293   :  { %1330 = vmatpush3.msra.mxu1 %v519_v44  ;;  %v785_v44 = vld [vmem:[#allocation2 + $0x438] sm:$0xff] }
 0x294   :  { %1331 = vmatprep.subr.mxu1 %v1520_v0 }
 0x295   :  { %1332 = vmatpush3.msra.mxu1 %v518_v45  ;;  %v784_v45 = vld [vmem:[#allocation2 + $0x430] sm:$0xff] }
 0x296   :  { %1333 = vmatprep.subr.mxu1 %v1520_v0 }
 0x297   :  { %1334 = vmatpush3.msra.mxu1 %v517_v46  ;;  %v783_v46 = vld [vmem:[#allocation2 + $0x428] sm:$0xff] }
 0x298   :  { %1335 = vmatprep.subr.mxu1 %v1520_v0 }
 0x299   :  { %1336 = vmatpush3.msra.mxu1 %v516_v47  ;;  %v782_v47 = vld [vmem:[#allocation2 + $0x420] sm:$0xff] }
 0x29a   :  { %1337 = vmatprep.subr.mxu1 %v1520_v0 }
 0x29b   :  { %1338 = vmatpush3.msra.mxu1 %v515_v48  ;;  %v781_v48 = vld [vmem:[#allocation2 + $0x418] sm:$0xff] }
 0x29c   :  { %1339 = vmatprep.subr.mxu1 %v1520_v0 }
 0x29d   :  { %1340 = vmatpush3.msra.mxu1 %v514_v49 }
 0x29e   :  { %1341 = vmatprep.subr.mxu1 %v1520_v0 }
 0x29f   :  { %1342 = vmatpush3.msra.mxu1 %v513_v50 }
 0x2a0   :  { %1343 = vmatprep.subr.mxu1 %v1520_v0 }
 0x2a1   :  { %1344 = vmatpush3.msra.mxu1 %v512_v57  ;;  %v881_v57 = vld [vmem:[#allocation2 + $0x4f0] sm:$0xff] }
 0x2a2   :  { %1345 = vmatprep.subr.mxu1 %v1520_v0 }
 0x2a3   :  { %1346 = vmatpush3.msra.mxu1 %v511_v58  ;;  %v880_v58 = vld [vmem:[#allocation2 + $0x4e8] sm:$0xff] }
 0x2a4   :  { %1385 = vmatprep.subr.mxu1 %v1520_v0 }
 0x344   :  { %v409_v52 = vpop.f32.mrf.mxu1 }
 0x345   :  { %v410_v53 = vadd.f32 %v967_v51, %v409_v52 }
 0x346   :  { %v1279_v54 = vpop.f32.mrf.mxu1 }
 0x347   :  { %v413_v55 = vmul.f32 0.01, %v410_v53  ;;  %v779_v54 = vld [vmem:[#allocation2 + $0x408] sm:$0xff] }
 0x349   :  { %v414_v56 = vmax.f32 %v410_v53, %v413_v55  ;;  %v780_v53 = vld [vmem:[#allocation2 + $0x410] sm:$0xff]  ;;  %v778_v55 = vld [vmem:[#allocation2 + $0x400] sm:$0xff] }
 0x34b   :  { %1313 = vmatmul.mubr.f32.vlgmr.msra.gmra.mxu0 %v414_v56  ;;  %v882_v56 = vld [vmem:[#allocation2 + $0x4f8] sm:$0xff] }
 0x34c   :  { %1382 = vmatprep.mubr.msk.f32.mxu0 %vm1521_vm0, %v1520_v0  ;;  %1351 = vmatpush3.msra.mxu0 %v615_v59  ;;  %v879_v59 = vld [vmem:[#allocation2 + $0x4e0] sm:$0xff] }
 0x34d   :  { %1352 = vmatprep.subr.mxu0 %v1520_v0 }
 0x34e   :  { %1353 = vmatpush3.msra.mxu0 %v614_v60  ;;  %v878_v60 = vld [vmem:[#allocation2 + $0x4d8] sm:$0xff] }
 0x34f   :  { %1354 = vmatprep.subr.mxu0 %v1520_v0 }
 0x350   :  { %1355 = vmatpush3.msra.mxu0 %v613_v61  ;;  %v877_v61 = vld [vmem:[#allocation2 + $0x4d0] sm:$0xff] }
 0x351   :  { %1356 = vmatprep.subr.mxu0 %v1520_v0 }
 0x352   :  { %1357 = vmatpush3.msra.mxu0 %v612_v62  ;;  %v876_v62 = vld [vmem:[#allocation2 + $0x4c8] sm:$0xff] }
 0x353   :  { %1358 = vmatprep.subr.mxu0 %v1520_v0 }
 0x354   :  { %1359 = vmatpush3.msra.mxu0 %v611_v63  ;;  %v875_v63 = vld [vmem:[#allocation2 + $0x4c0] sm:$0xff] }
 0x355   :  { %1360 = vmatprep.subr.mxu0 %v1520_v0 }
 0x356   :  { %1361 = vmatpush3.msra.mxu0 %v610_v1  ;;  %v874_v1 = vld [vmem:[#allocation2 + $0x4b8] sm:$0xff] }
 0x357   :  { %1362 = vmatprep.subr.mxu0 %v1520_v0 }
 0x358   :  { %1363 = vmatpush3.msra.mxu0 %v609_v2  ;;  %v873_v2 = vld [vmem:[#allocation2 + $0x4b0] sm:$0xff] }
 0x359   :  { %1364 = vmatprep.subr.mxu0 %v1520_v0 }
 0x35a   :  { %1365 = vmatpush3.msra.mxu0 %v608_v3  ;;  %v872_v3 = vld [vmem:[#allocation2 + $0x4a8] sm:$0xff] }
 0x35b   :  { %1366 = vmatprep.subr.mxu0 %v1520_v0 }
 0x35c   :  { %1367 = vmatpush3.msra.mxu0 %v607_v4  ;;  %v871_v4 = vld [vmem:[#allocation2 + $0x4a0] sm:$0xff] }
 0x35d   :  { %1368 = vmatprep.subr.mxu0 %v1520_v0 }
 0x35e   :  { %1369 = vmatpush3.msra.mxu0 %v606_v5  ;;  %v870_v5 = vld [vmem:[#allocation2 + $0x498] sm:$0xff] }
 0x35f   :  { %1370 = vmatprep.subr.mxu0 %v1520_v0 }
 0x360   :  { %1371 = vmatpush3.msra.mxu0 %v605_v6 }
 0x361   :  { %1372 = vmatprep.subr.mxu0 %v1520_v0 }
 0x362   :  { %1373 = vmatpush3.msra.mxu0 %v604_v7 }
 0x363   :  { %1374 = vmatprep.subr.mxu0 %v1520_v0 }
 0x364   :  { %1375 = vmatpush3.msra.mxu0 %v603_v8 }
 0x365   :  { %1376 = vmatprep.subr.mxu0 %v1520_v0 }
 0x366   :  { %1377 = vmatpush3.msra.mxu0 %v602_v13 }
 0x367   :  { %1378 = vmatprep.subr.mxu0 %v1520_v0 }
 0x368   :  { %1379 = vmatpush3.msra.mxu0 %v601_v14 }
 0x369   :  { %1380 = vmatprep.subr.mxu0 %v1520_v0 }
 0x36a   :  { %1381 = vmatpush3.msra.mxu0 %v600_v15 }
 0x36b   :  { %1420 = vmatprep.subr.mxu0 %v1520_v0 }
 0x40b   :  { %v506_v10 = vpop.f32.mrf.mxu0 }
 0x40c   :  { %v507_v11 = vadd.f32 %v969_v9, %v506_v10  ;;  %v869_v10 = vld [vmem:[#allocation2 + $0x490] sm:$0xff] }
 0x40d   :  { %v1314_v12 = vpop.f32.mrf.mxu0 }
 0x40e   :  { %1348 = vmatmul.mubr.f32.vlgmr.msra.gmra.mxu1 %v507_v11  ;;  %v868_v11 = vld [vmem:[#allocation2 + $0x488] sm:$0xff]  ;;  %v867_v12 = vld [vmem:[#allocation2 + $0x480] sm:$0xff] }
 0x40f   :  { %1417 = vmatprep.mubr.msk.f32.mxu1 %vm1521_vm0, %v1520_v0  ;;  %1386 = vmatpush3.msra.mxu1 %v704_v16 }
 0x410   :  { %1387 = vmatprep.subr.mxu1 %v1520_v0 }
 0x411   :  { %1388 = vmatpush3.msra.mxu1 %v703_v17 }
 0x412   :  { %1389 = vmatprep.subr.mxu1 %v1520_v0 }
 0x413   :  { %1390 = vmatpush3.msra.mxu1 %v702_v18 }
 0x414   :  { %1391 = vmatprep.subr.mxu1 %v1520_v0 }
 0x415   :  { %1392 = vmatpush3.msra.mxu1 %v701_v19 }
 0x416   :  { %1393 = vmatprep.subr.mxu1 %v1520_v0 }
 0x417   :  { %1394 = vmatpush3.msra.mxu1 %v700_v20 }
 0x418   :  { %1395 = vmatprep.subr.mxu1 %v1520_v0 }
 0x419   :  { %1396 = vmatpush3.msra.mxu1 %v699_v21 }
 0x41a   :  { %1397 = vmatprep.subr.mxu1 %v1520_v0 }
 0x41b   :  { %1398 = vmatpush3.msra.mxu1 %v698_v22 }
 0x41c   :  { %1399 = vmatprep.subr.mxu1 %v1520_v0 }
 0x41d   :  { %1400 = vmatpush3.msra.mxu1 %v697_v23 }
 0x41e   :  { %1401 = vmatprep.subr.mxu1 %v1520_v0 }
 0x41f   :  { %1402 = vmatpush3.msra.mxu1 %v696_v24 }
 0x420   :  { %1403 = vmatprep.subr.mxu1 %v1520_v0 }
 0x421   :  { %1404 = vmatpush3.msra.mxu1 %v695_v25 }
 0x422   :  { %1405 = vmatprep.subr.mxu1 %v1520_v0 }
 0x423   :  { %1406 = vmatpush3.msra.mxu1 %v694_v26 }
 0x424   :  { %1407 = vmatprep.subr.mxu1 %v1520_v0 }
 0x425   :  { %1408 = vmatpush3.msra.mxu1 %v693_v27 }
 0x426   :  { %1409 = vmatprep.subr.mxu1 %v1520_v0 }
 0x427   :  { %1410 = vmatpush3.msra.mxu1 %v692_v28 }
 0x428   :  { %1411 = vmatprep.subr.mxu1 %v1520_v0 }
 0x429   :  { %1412 = vmatpush3.msra.mxu1 %v691_v33 }
 0x42a   :  { %1413 = vmatprep.subr.mxu1 %v1520_v0 }
 0x42b   :  { %1414 = vmatpush3.msra.mxu1 %v690_v34 }
 0x42c   :  { %1415 = vmatprep.subr.mxu1 %v1520_v0 }
 0x42d   :  { %1416 = vmatpush3.msra.mxu1 %v689_v35 }
 0x42e   :  { %1455 = vmatprep.subr.mxu1 %v1520_v0 }
 0x4ce   :  { %v593_v29 = vpop.f32.mrf.mxu1 }
 0x4cf   :  { %v597_v30 = vmul.f32 0.01, %v593_v29 }
 0x4d0   :  { %v1349_v31 = vpop.f32.mrf.mxu1 }
 0x4d1   :  { %v598_v32 = vmax.f32 %v593_v29, %v597_v30 }
 0x4d3   :  { %1383 = vmatmul.mubr.f32.vlgmr.msra.gmra.mxu0 %v598_v32 }
 0x4d4   :  { %1452 = vmatprep.mubr.msk.f32.mxu0 %vm1521_vm0, %v1520_v0  ;;  %1421 = vmatpush3.msra.mxu0 %v793_v36 }
 0x4d5   :  { %1422 = vmatprep.subr.mxu0 %v1520_v0 }
 0x4d6   :  { %1423 = vmatpush3.msra.mxu0 %v792_v37 }
 0x4d7   :  { %1424 = vmatprep.subr.mxu0 %v1520_v0 }
 0x4d8   :  { %1425 = vmatpush3.msra.mxu0 %v791_v38 }
 0x4d9   :  { %1426 = vmatprep.subr.mxu0 %v1520_v0 }
 0x4da   :  { %1427 = vmatpush3.msra.mxu0 %v790_v39 }
 0x4db   :  { %1428 = vmatprep.subr.mxu0 %v1520_v0 }
 0x4dc   :  { %1429 = vmatpush3.msra.mxu0 %v789_v40 }
 0x4dd   :  { %1430 = vmatprep.subr.mxu0 %v1520_v0 }
 0x4de   :  { %1431 = vmatpush3.msra.mxu0 %v788_v41 }
 0x4df   :  { %1432 = vmatprep.subr.mxu0 %v1520_v0 }
 0x4e0   :  { %1433 = vmatpush3.msra.mxu0 %v787_v42 }
 0x4e1   :  { %1434 = vmatprep.subr.mxu0 %v1520_v0 }
 0x4e2   :  { %1435 = vmatpush3.msra.mxu0 %v786_v43 }
 0x4e3   :  { %1436 = vmatprep.subr.mxu0 %v1520_v0 }
 0x4e4   :  { %1437 = vmatpush3.msra.mxu0 %v785_v44 }
 0x4e5   :  { %1438 = vmatprep.subr.mxu0 %v1520_v0 }
 0x4e6   :  { %1439 = vmatpush3.msra.mxu0 %v784_v45 }
 0x4e7   :  { %1440 = vmatprep.subr.mxu0 %v1520_v0 }
 0x4e8   :  { %1441 = vmatpush3.msra.mxu0 %v783_v46 }
 0x4e9   :  { %1442 = vmatprep.subr.mxu0 %v1520_v0 }
 0x4ea   :  { %1443 = vmatpush3.msra.mxu0 %v782_v47 }
 0x4eb   :  { %1444 = vmatprep.subr.mxu0 %v1520_v0 }
 0x4ec   :  { %1445 = vmatpush3.msra.mxu0 %v781_v48 }
 0x4ed   :  { %1446 = vmatprep.subr.mxu0 %v1520_v0 }
 0x4ee   :  { %1447 = vmatpush3.msra.mxu0 %v780_v53 }
 0x4ef   :  { %1448 = vmatprep.subr.mxu0 %v1520_v0 }
 0x4f0   :  { %1449 = vmatpush3.msra.mxu0 %v779_v54 }
 0x4f1   :  { %1450 = vmatprep.subr.mxu0 %v1520_v0 }
 0x4f2   :  { %1451 = vmatpush3.msra.mxu0 %v778_v55 }
 0x593   :  { %v682_v49 = vpop.f32.mrf.mxu0 }
 0x594   :  { %v686_v50 = vmul.f32 0.01, %v682_v49 }
 0x595   :  { %v1384_v51 = vpop.f32.mrf.mxu0 }
 0x596   :  { %v687_v52 = vmax.f32 %v682_v49, %v686_v50 }
 0x598   :  { %1418 = vmatmul.mubr.f32.vlgmr.msra.gmra.mxu1 %v687_v52 }
 0x599   :  { %1487 = vmatprep.mubr.msk.f32.mxu1 %vm1521_vm0, %v1520_v0  ;;  %1456 = vmatpush3.msra.mxu1 %v882_v56 }
 0x59a   :  { %1457 = vmatprep.subr.mxu1 %v1520_v0 }
 0x59b   :  { %1458 = vmatpush3.msra.mxu1 %v881_v57 }
 0x59c   :  { %1459 = vmatprep.subr.mxu1 %v1520_v0 }
 0x59d   :  { %1460 = vmatpush3.msra.mxu1 %v880_v58 }
 0x59e   :  { %1461 = vmatprep.subr.mxu1 %v1520_v0 }
 0x59f   :  { %1462 = vmatpush3.msra.mxu1 %v879_v59 }
 0x5a0   :  { %1463 = vmatprep.subr.mxu1 %v1520_v0 }
 0x5a1   :  { %1464 = vmatpush3.msra.mxu1 %v878_v60 }
 0x5a2   :  { %1465 = vmatprep.subr.mxu1 %v1520_v0 }
 0x5a3   :  { %1466 = vmatpush3.msra.mxu1 %v877_v61 }
 0x5a4   :  { %1467 = vmatprep.subr.mxu1 %v1520_v0 }
 0x5a5   :  { %1468 = vmatpush3.msra.mxu1 %v876_v62 }
 0x5a6   :  { %1469 = vmatprep.subr.mxu1 %v1520_v0 }
 0x5a7   :  { %1470 = vmatpush3.msra.mxu1 %v875_v63 }
 0x5a8   :  { %1471 = vmatprep.subr.mxu1 %v1520_v0 }
 0x5a9   :  { %1472 = vmatpush3.msra.mxu1 %v874_v1 }
 0x5aa   :  { %1473 = vmatprep.subr.mxu1 %v1520_v0 }
 0x5ab   :  { %1474 = vmatpush3.msra.mxu1 %v873_v2 }
 0x5ac   :  { %1475 = vmatprep.subr.mxu1 %v1520_v0 }
 0x5ad   :  { %1476 = vmatpush3.msra.mxu1 %v872_v3 }
 0x5ae   :  { %1477 = vmatprep.subr.mxu1 %v1520_v0 }
 0x5af   :  { %1478 = vmatpush3.msra.mxu1 %v871_v4 }
 0x5b0   :  { %1479 = vmatprep.subr.mxu1 %v1520_v0 }
 0x5b1   :  { %1480 = vmatpush3.msra.mxu1 %v870_v5 }
 0x5b2   :  { %1481 = vmatprep.subr.mxu1 %v1520_v0 }
 0x5b3   :  { %1482 = vmatpush3.msra.mxu1 %v869_v10 }
 0x5b4   :  { %1483 = vmatprep.subr.mxu1 %v1520_v0 }
 0x5b5   :  { %1484 = vmatpush3.msra.mxu1 %v868_v11 }
 0x5b6   :  { %1485 = vmatprep.subr.mxu1 %v1520_v0 }
 0x5b7   :  { %1486 = vmatpush3.msra.mxu1 %v867_v12 }
 0x658   :  { %v771_v6 = vpop.f32.mrf.mxu1 }
 0x659   :  { %v775_v7 = vmul.f32 0.01, %v771_v6 }
 0x65a   :  { %v1419_v8 = vpop.f32.mrf.mxu1 }
 0x65b   :  { %v776_v9 = vmax.f32 %v771_v6, %v775_v7 }
 0x65d   :  { %1453 = vmatmul.mubr.f32.vlgmr.msra.gmra.mxu0 %v776_v9 }
 0x71d   :  { %v860_v13 = vpop.f32.mrf.mxu0 }
 0x71e   :  { %v864_v14 = vmul.f32 0.01, %v860_v13 }
 0x71f   :  { %v1454_v15 = vpop.f32.mrf.mxu0 }
 0x720   :  { %v865_v16 = vmax.f32 %v860_v13, %v864_v14 }
 0x722   :  { %1488 = vmatmul.mubr.f32.vlgmr.msra.gmra.mxu1 %v865_v16 }
 0x7e2   :  { %v949_v17 = vpop.f32.mrf.mxu1 }
 0x7e3   :  { %v953_v18 = vmul.f32 0.01, %v949_v17 }
 0x7e4   :  { %v1489_v19 = vpop.f32.mrf.mxu1 }
 0x7e5   :  { %v954_v20 = vmax.f32 %v949_v17, %v953_v18 }
 0x7e7   :  { %955 = vst [vmem:[%s1749_s3] sm:$0xff] %v954_v20 }
 0x7e8   :  { %960 = vsyncpa [#allocation3], 1 }

</bundles_post_ra>
